<compile_context>
chip_gen: v7x
topology: tpu7x:2x2x1
jax: 0.10.0
libtpu: 0.0.40
codegen_flags: <defaults>
</compile_context>

<pallas_src>
import jax
import jax.numpy as jnp
from jax.experimental import pallas as pl
from jax.experimental.pallas import tpu as pltpu


def _round_up(n: int, m: int) -> int:
    return ((n + m - 1) // m) * m


def perceptron_kernel(x_ref, w_h_ref, b_h_ref, w4_ref, b4_ref, o_ref):
    """One batch tile of the MLP, computed in transposed (feature-major) form.

    x_ref:   (TILE_M, 10)    input rows for this grid step
    w_h_ref: (3, 10, 10)     hidden weights, PyTorch (out, in) layout
    b_h_ref: (3, 10, 1)      hidden biases as columns
    w4_ref:  (1, 10)         output-layer weight
    b4_ref:  (1, 1)          output-layer bias
    o_ref:   (1, 1, TILE_M)  lane-dense output row for this tile
    """
    x = x_ref[...]                                      # (TILE_M, 10)

    # Layer 1: h1^T = relu(W1 @ x^T + b1).  The einsum contracts both minor
    # dims (same pattern as q @ k^T), so no explicit transpose op is needed
    # and all downstream activations are lane-dense (10, TILE_M).
    h = jnp.einsum("oi,mi->om", w_h_ref[0], x,
                   preferred_element_type=jnp.float32) + b_h_ref[0]
    h = jnp.maximum(h, 0.0)

    # Layers 2..3: h^T = relu(W @ h^T + b), statically unrolled.
    for l in (1, 2):
        h = jnp.dot(w_h_ref[l], h,
                    preferred_element_type=jnp.float32) + b_h_ref[l]
        h = jnp.maximum(h, 0.0)

    # Output layer: (1, 10) @ (10, TILE_M) -> (1, TILE_M) lane-dense row.
    o = jnp.dot(w4_ref[...], h,
                preferred_element_type=jnp.float32) + b4_ref[...]
    o_ref[...] = o.reshape(o_ref.shape).astype(o_ref.dtype)


def prepare_params(params):
    """One-time parameter prep (done at init, NOT per forward call).

    params: list of (W, b) with W in PyTorch (out_features, in_features).
    Returns stacked operands; no transposes needed since the kernel works in
    the transposed orientation (y^T = W x^T + b^T).
    """
    (w1, b1), (w2, b2), (w3, b3), (w4, b4) = params
    w_h = jnp.stack([w1, w2, w3])                 # (3, 10, 10)
    b_h = jnp.stack([b1, b2, b3])[..., None]      # (3, 10, 1)
    w4p = w4                                      # (1, 10)
    b4p = b4.reshape(1, 1)                        # (1, 1)
    return w_h, b_h, w4p, b4p


def perceptron_forward(x, prepped, *, tile_m: int = 1024):
    """x: (batch, 10) float32. prepped: output of prepare_params."""
    w_h, b_h, w4p, b4p = prepped
    batch, feat = x.shape

    # Tile sizing: large tiles amortize the ~0.35 us/step grid overhead, but
    # don't exceed what the batch needs.  Always a multiple of 128 (lanes).
    tile_m = min(tile_m, _round_up(max(batch, 1), 128))
    batch_p = _round_up(batch, tile_m)
    if batch_p != batch:
        x = jnp.pad(x, ((0, batch_p - batch), (0, 0)))
    num_tiles = batch_p // tile_m

    out = pl.pallas_call(
        perceptron_kernel,
        out_shape=jax.ShapeDtypeStruct((num_tiles, 1, tile_m), jnp.float32),
        grid=(num_tiles,),
        in_specs=[
            # Per-step batch tile (pipelined / double-buffered).
            pl.BlockSpec((tile_m, feat), lambda i: (i, 0)),
            # Constant index maps -> weights/biases stay VMEM-resident.
            pl.BlockSpec(w_h.shape, lambda i: (0, 0, 0)),
            pl.BlockSpec(b_h.shape, lambda i: (0, 0, 0)),
            pl.BlockSpec(w4p.shape, lambda i: (0, 0)),
            pl.BlockSpec(b4p.shape, lambda i: (0, 0)),
        ],
        # Lane-dense output: one (1, TILE_M) row per grid step.
        out_specs=pl.BlockSpec((1, 1, tile_m), lambda i: (i, 0, 0)),
        compiler_params=pltpu.CompilerParams(
            dimension_semantics=("parallel",)),   # lets v7x use both TCs
    )(x, w_h, b_h, w4p, b4p)

    # (num_tiles, 1, TILE_M) row-major flatten == original batch order.
    return out.reshape(batch_p, 1)[:batch]


def init_params(key):
    """Deterministic init mimicking PyTorch nn.Linear default U[-1/sqrt(in), 1/sqrt(in)]."""
    dims = [(10, 10), (10, 10), (10, 10), (1, 10)]   # (out, in) per layer
    params = []
    for (out_d, in_d) in dims:
        key, kw, kb = jax.random.split(key, 3)
        bound = 1.0 / jnp.sqrt(jnp.float32(in_d))
        w = jax.random.uniform(kw, (out_d, in_d), jnp.float32, -bound, bound)
        b = jax.random.uniform(kb, (out_d,), jnp.float32, -bound, bound)
        params.append((w, b))
    return params


def reference_forward(x, params):
    """Pure-JAX reference of the same MLP (for correctness check)."""
    h = x
    for i, (w, b) in enumerate(params):
        h = h @ w.T + b
        if i < len(params) - 1:
            h = jnp.maximum(h, 0.0)
    return h


if __name__ == "__main__":
    key = jax.random.PRNGKey(0)
    key, kx = jax.random.split(key)
    # Small in bytes (~100 KiB), but > TILE_M so the multi-step grid,
    # pipelining, batch padding and tail slicing paths are all exercised.
    batch = 2600
    x = jax.random.normal(kx, (batch, 10), jnp.float32)

    params = init_params(key)
    prepped = prepare_params(params)     # one-time prep, outside the hot path

    out = perceptron_forward(x, prepped)
    out = jax.block_until_ready(out)

    ref = reference_forward(x, params)
    assert out.shape == (batch, 1), out.shape
    assert jnp.allclose(out, ref, atol=1e-4, rtol=1e-4), (out, ref)

    print("KERNEL_OK")
</pallas_src>

<mosaic_0001>
module attributes {stable_mosaic.version = 11 : i64} {
  func.func @perceptron_kernel(%arg0: i32, %arg1: memref<1024x10xf32, #tpu.memory_space<vmem>>, %arg2: memref<3x10x10xf32, #tpu.memory_space<vmem>>, %arg3: memref<3x10x1xf32, #tpu.memory_space<vmem>>, %arg4: memref<1x10xf32, #tpu.memory_space<vmem>>, %arg5: memref<1x1xf32, #tpu.memory_space<vmem>>, %arg6: memref<1x1x1024xf32, #tpu.memory_space<vmem>>) attributes {dimension_semantics = [#tpu.dimension_semantics<parallel>], iteration_bounds = array<i64: 3>, scalar_prefetch = 0 : i64, scratch_operands = 0 : i64, tpu.core_type = #tpu.core_type<tc>, window_params = [{transform_indices = @transform_0, window_bounds = array<i64: 1024, 10>}, {pipeline_mode = #tpu.pipeline_mode<synchronous>, transform_indices = @transform_1, window_bounds = array<i64: 3, 10, 10>}, {pipeline_mode = #tpu.pipeline_mode<synchronous>, transform_indices = @transform_2, window_bounds = array<i64: 3, 10, 1>}, {pipeline_mode = #tpu.pipeline_mode<synchronous>, transform_indices = @transform_3, window_bounds = array<i64: 1, 10>}, {pipeline_mode = #tpu.pipeline_mode<synchronous>, transform_indices = @transform_4, window_bounds = array<i64: 1, 1>}, {transform_indices = @transform_5, window_bounds = array<i64: 1, 1, 1024>}]} {
    %c0 = arith.constant 0 : index
    %c0_0 = arith.constant 0 : index
    %0 = vector.load %arg1[%c0, %c0_0] : memref<1024x10xf32, #tpu.memory_space<vmem>>, vector<1024x10xf32>
    %c0_1 = arith.constant 0 : index
    %c0_2 = arith.constant 0 : index
    %c0_3 = arith.constant 0 : index
    %1 = vector.load %arg2[%c0_1, %c0_2, %c0_3] : memref<3x10x10xf32, #tpu.memory_space<vmem>>, vector<1x10x10xf32>
    %2 = vector.shape_cast %1 : vector<1x10x10xf32> to vector<10x10xf32>
    "tpu.trace_start"() <{level = 10 : i32, message = "oi,mi->om"}> : () -> ()
    %cst = arith.constant dense<0.000000e+00> : vector<10x1024xf32>
    %3 = tpu.matmul %2, %0, %cst {dimension_numbers = #tpu.dot_dimension_numbers<[1], [1], [0], [0], [0, 0, 1, 0], [], []>} : vector<10x10xf32>, vector<1024x10xf32>, vector<10x1024xf32> -> vector<10x1024xf32>
    "tpu.trace_stop"() : () -> ()
    %c0_4 = arith.constant 0 : index
    %c0_5 = arith.constant 0 : index
    %c0_6 = arith.constant 0 : index
    %4 = vector.load %arg3[%c0_4, %c0_5, %c0_6] : memref<3x10x1xf32, #tpu.memory_space<vmem>>, vector<1x10x1xf32>
    %5 = vector.shape_cast %4 : vector<1x10x1xf32> to vector<10x1xf32>
    %6 = vector.broadcast %5 : vector<10x1xf32> to vector<10x1024xf32>
    %7 = arith.addf %3, %6 : vector<10x1024xf32>
    %cst_7 = arith.constant 0.000000e+00 : f32
    %8 = vector.broadcast %cst_7 : f32 to vector<10x1024xf32>
    %9 = arith.maximumf %7, %8 : vector<10x1024xf32>
    %c1 = arith.constant 1 : index
    %c0_8 = arith.constant 0 : index
    %c0_9 = arith.constant 0 : index
    %10 = vector.load %arg2[%c1, %c0_8, %c0_9] : memref<3x10x10xf32, #tpu.memory_space<vmem>>, vector<1x10x10xf32>
    %11 = vector.shape_cast %10 : vector<1x10x10xf32> to vector<10x10xf32>
    %cst_10 = arith.constant dense<0.000000e+00> : vector<10x1024xf32>
    %12 = tpu.matmul %11, %9, %cst_10 {dimension_numbers = #tpu.dot_dimension_numbers<[1], [0], [0], [1], [0, 0, 1, 1], [], []>} : vector<10x10xf32>, vector<10x1024xf32>, vector<10x1024xf32> -> vector<10x1024xf32>
    %c1_11 = arith.constant 1 : index
    %c0_12 = arith.constant 0 : index
    %c0_13 = arith.constant 0 : index
    %13 = vector.load %arg3[%c1_11, %c0_12, %c0_13] : memref<3x10x1xf32, #tpu.memory_space<vmem>>, vector<1x10x1xf32>
    %14 = vector.shape_cast %13 : vector<1x10x1xf32> to vector<10x1xf32>
    %15 = vector.broadcast %14 : vector<10x1xf32> to vector<10x1024xf32>
    %16 = arith.addf %12, %15 : vector<10x1024xf32>
    %cst_14 = arith.constant 0.000000e+00 : f32
    %17 = vector.broadcast %cst_14 : f32 to vector<10x1024xf32>
    %18 = arith.maximumf %16, %17 : vector<10x1024xf32>
    %c2 = arith.constant 2 : index
    %c0_15 = arith.constant 0 : index
    %c0_16 = arith.constant 0 : index
    %19 = vector.load %arg2[%c2, %c0_15, %c0_16] : memref<3x10x10xf32, #tpu.memory_space<vmem>>, vector<1x10x10xf32>
    %20 = vector.shape_cast %19 : vector<1x10x10xf32> to vector<10x10xf32>
    %cst_17 = arith.constant dense<0.000000e+00> : vector<10x1024xf32>
    %21 = tpu.matmul %20, %18, %cst_17 {dimension_numbers = #tpu.dot_dimension_numbers<[1], [0], [0], [1], [0, 0, 1, 1], [], []>} : vector<10x10xf32>, vector<10x1024xf32>, vector<10x1024xf32> -> vector<10x1024xf32>
    %c2_18 = arith.constant 2 : index
    %c0_19 = arith.constant 0 : index
    %c0_20 = arith.constant 0 : index
    %22 = vector.load %arg3[%c2_18, %c0_19, %c0_20] : memref<3x10x1xf32, #tpu.memory_space<vmem>>, vector<1x10x1xf32>
    %23 = vector.shape_cast %22 : vector<1x10x1xf32> to vector<10x1xf32>
    %24 = vector.broadcast %23 : vector<10x1xf32> to vector<10x1024xf32>
    %25 = arith.addf %21, %24 : vector<10x1024xf32>
    %cst_21 = arith.constant 0.000000e+00 : f32
    %26 = vector.broadcast %cst_21 : f32 to vector<10x1024xf32>
    %27 = arith.maximumf %25, %26 : vector<10x1024xf32>
    %c0_22 = arith.constant 0 : index
    %c0_23 = arith.constant 0 : index
    %28 = vector.load %arg4[%c0_22, %c0_23] : memref<1x10xf32, #tpu.memory_space<vmem>>, vector<1x10xf32>
    %cst_24 = arith.constant dense<0.000000e+00> : vector<1x1024xf32>
    %29 = tpu.matmul %28, %27, %cst_24 {dimension_numbers = #tpu.dot_dimension_numbers<[1], [0], [0], [1], [0, 0, 1, 1], [], []>} : vector<1x10xf32>, vector<10x1024xf32>, vector<1x1024xf32> -> vector<1x1024xf32>
    %c0_25 = arith.constant 0 : index
    %c0_26 = arith.constant 0 : index
    %30 = vector.load %arg5[%c0_25, %c0_26] : memref<1x1xf32, #tpu.memory_space<vmem>>, vector<1x1xf32>
    %31 = vector.broadcast %30 : vector<1x1xf32> to vector<1x1024xf32>
    %32 = arith.addf %29, %31 : vector<1x1024xf32>
    %33 = vector.shape_cast %32 : vector<1x1024xf32> to vector<1x1x1024xf32>
    %c0_27 = arith.constant 0 : index
    %c0_28 = arith.constant 0 : index
    %c0_29 = arith.constant 0 : index
    %34 = vector.load %arg6[%c0_27, %c0_28, %c0_29] : memref<1x1x1024xf32, #tpu.memory_space<vmem>>, vector<1x1x1024xf32>
    tpu.vector_store %arg6[%c0_27, %c0_28, %c0_29], %33 {strides = array<i32>} : memref<1x1x1024xf32, #tpu.memory_space<vmem>>, vector<1x1x1024xf32>,
    return
  }
  func.func @transform_0(%arg0: i32) -> (i32, i32) {
    %c0_i32 = arith.constant 0 : i32
    %c0_i32_0 = arith.constant 0 : i32
    return %arg0, %c0_i32 : i32, i32
  }
  func.func @transform_1(%arg0: i32) -> (i32, i32, i32) {
    %c0_i32 = arith.constant 0 : i32
    %c0_i32_0 = arith.constant 0 : i32
    %c0_i32_1 = arith.constant 0 : i32
    %c0_i32_2 = arith.constant 0 : i32
    return %c0_i32, %c0_i32_0, %c0_i32_1 : i32, i32, i32
  }
  func.func @transform_2(%arg0: i32) -> (i32, i32, i32) {
    %c0_i32 = arith.constant 0 : i32
    %c0_i32_0 = arith.constant 0 : i32
    %c0_i32_1 = arith.constant 0 : i32
    %c0_i32_2 = arith.constant 0 : i32
    return %c0_i32, %c0_i32_0, %c0_i32_1 : i32, i32, i32
  }
  func.func @transform_3(%arg0: i32) -> (i32, i32) {
    %c0_i32 = arith.constant 0 : i32
    %c0_i32_0 = arith.constant 0 : i32
    %c0_i32_1 = arith.constant 0 : i32
    return %c0_i32, %c0_i32_0 : i32, i32
  }
  func.func @transform_4(%arg0: i32) -> (i32, i32) {
    %c0_i32 = arith.constant 0 : i32
    %c0_i32_0 = arith.constant 0 : i32
    %c0_i32_1 = arith.constant 0 : i32
    return %c0_i32, %c0_i32_0 : i32, i32
  }
  func.func @transform_5(%arg0: i32) -> (i32, i32, i32) {
    %c0_i32 = arith.constant 0 : i32
    %c0_i32_0 = arith.constant 0 : i32
    %c0_i32_1 = arith.constant 0 : i32
    return %arg0, %c0_i32, %c0_i32_0 : i32, i32, i32
  }
}

</mosaic_0001>

<bundles_post_ra>
// kernel: tpu_custom_call.1
= control target key start
LH: loop header
LB: loop body
LE: loop exit
PB: predicated region body
PF: predicated region fallthrough
CT: control target
= control target key end

     0   :  { %s3566_s0 = inlined_call_operand.vmem [shape: f32[3072,10], index: 0, kind: input, shape index: {}]   ;;  %s3567_s1 = inlined_call_operand.vmem [shape: f32[3,10,10], index: 1, kind: input, shape index: {}]   ;;  %s3568_s2 = inlined_call_operand.vmem [shape: f32[3,10,1], index: 2, kind: input, shape index: {}]   ;;  %s3569_s3 = inlined_call_operand.vmem [shape: f32[1,10], index: 3, kind: input, shape index: {}]   ;;  %s3570_s4 = inlined_call_operand.<no memory space> [shape: f32[1,1], index: 4, kind: input, shape index: {}]   ;;  %s3571_s5 = inlined_call_operand.hbm [shape: f32[3,1,1024], index: 5, kind: output, shape index: {}]  }
   0x1   :  { %v10_v0 = vstv %s3570_s4 }
   0x2   :  { %11 = vst [vmem:[#allocation2] sm:$0x1] %v10_v0 }
   0x3   :  { %12 = vsyncpa [#allocation4], 0 }
   0x4   :  { %14 = vsyncpa [#allocation4 + $0x1], 0  ;;  %s3036_s20 = smov 0   ;;  %s3038_s21 = smov 0  }
   0x5   :  { %s3040_s22 = smov 0   ;;  %s3042_s23 = smov 0  }
   0x6 LB: > { %s2279_s4 = sadd.s32 4294967295, %s2996_s23   ;;  %s2280_s24 = sadd.s32 4294967294, %s2996_s23   ;;  %s2996_s23 = sphi %s3042_s23, %s3581_s23   ;;  %s2992_s22 = sphi %s3040_s22, %s3580_s22   ;;  %s2988_s21 = sphi %s3038_s21, %s3579_s21   ;;  %s2984_s20 = sphi %s3036_s20, %s3578_s20  }
   0x7   : > { %s3059_s25 = sadd.s32 1, %s2996_s23   ;;  %s137_s26 = sadd.s32 1, %s2992_s22 }
   0x8   : > { %s134_s27 = ssub.s32 %s2996_s23, %s3059_s25  ;;  %p147_p0 = scmp.ne.s32.totalorder %s2992_s22, %s2988_s21 }
   0x9   : > { %p135_p1 = scmp.eq.s32.totalorder %s134_s27, 0  ;;  %p148_p2 = scmp.eq.s32.totalorder %s2279_s4, 2 }
   0xa   : > { %p153_p3 = scmp.ne.s32.totalorder %s2988_s21, %s2984_s20  ;;  %p154_p4 = scmp.eq.s32.totalorder %s2280_s24, 2 }
   0xb   : > { %s3069_s28 = scalar_select %p135_p1, %s2992_s22, %s137_s26  }
   0xc   : > { %p3071_p5 = por %p148_p2, %p147_p0  ;;  %p3075_p6 = por %p154_p4, %p153_p3 }
   0xd   : > { %p2283_p7 = scmp.ge.s32.totalorder %s2996_s23, 1  ;;  %p193_p8 = scmp.lt.s32.totalorder %s2996_s23, 4 }
   0xf   : > { %p194_p9 = pnand %p2283_p7, %p193_p8 }
  0x10   : > { %s3081_s6 = sshll.u32 (!%p194_p9), %s2279_s4, 7  ;;  %vm369_vm0 = vcmask (!%p194_p9), 80896   ;;  %v3086_v1 = vld [vmem:[%s3567_s1] sm:$0xff] (!%p194_p9)  ;;  %v2998_v32 = vmov (!%p194_p9), 0   ;;  %v2999_v2 = vmov (!%p194_p9), 0.0   ;;  %vm1106_vm2 = vcmask (!%p194_p9), 1041408  }
  0x11   : > { %197 = sbr.rel (%p194_p9) target bundleno = 1081 (0x439), region = 40  ;;  %p222_p10 = scmp.lt.s32.totalorder (!%p194_p9), %s3081_s6, 383  ;;  %2513 = vmatprep.mubr.msk.f32.mxu0 (!%p194_p9), %vm369_vm0, %v3086_v1  ;;  %2549 = vmatprep.mubr.msk.f32.mxu1 (!%p194_p9), %vm369_vm0, %v3086_v1  ;;  %vm3101_vm1 = vmpackc.low (!%p194_p9), %vm369_vm0, %vm369_vm0  ;;  %vm3000_vm3 = vmmov (!%p194_p9), 1  }
  0x12   : > { %2932 = vset.pattern.permute.xlu0 (!%p194_p9), %v2998_v32  ;;  %2933 = vset.pattern.permute.xlu1 (!%p194_p9), %v2998_v32  ;;  %vm3414_vm4 = vmpackc.low (!%p194_p9), %vm1106_vm2, %vm3000_vm3  ;;  %s218_s24 = sand.u32 (!%p194_p9), 1, %s2988_s21  }
  0x13   : > { %s2284_s26 = sshll.u32 (!%p194_p9), %s218_s24, 3  ;;  %s2207_s11 = scalar_lea.sflag (!%p194_p9), [#allocation4], %s218_s24 }
  0x14   : > { %s220_s27 = scalar_lea.vmem (!%p194_p9), [#allocation3], %s2284_s26 }
  0x15   : > { %s2221_s7 = sshll.u32 (!%p194_p9), %s220_s27, 4  ;;  %s3526_s7 = int_to_ptr.vmem [resolvable:$true] %s2221_s7 }
  0x16   : > { %s2934_s12 = scalar_lea.vmem (!%p194_p9), %s3526_s7, 128 }
  0x17   : > { %p2935_p11 = scmp.ne.s32.totalorder (!%p194_p9), %s3526_s7, %s2934_s12 }
  0x18   : > { %s223_s9 = scalar_select %p222_p10, %s3081_s6, 383 }
  0x19   : > { %p2936_p12 = pnand %p2935_p11, %p3071_p5 }
  0x1a   : > { %s2286_s10 = sshll.u32 %s223_s9, 3 }
  0x1b   : > { %s3097_s13 = scalar_lea.vmem %s3566_s0, %s2286_s10  ;;  %s3524_s10 = scalar_lea.hbm %s3571_s5, %s3081_s6 }
  0x1c   : > { %v243_v3 = vld [vmem:[%s3097_s13 + $0x80] sm:$0xff]  ;;  %v244_v4 = vld [vmem:[%s3097_s13 + $0x88] sm:$0xff]  ;;  %v245_v14 = vld [vmem:[%s3097_s13 + $0x90] sm:$0xff]  ;;  %p2937_p13 = pneg %p2936_p12 }
  0x1d   : > { %v275_v5 = vld [vmem:[%s3097_s13 + $0x180] sm:$0xff]  ;;  %v2625_v6 = vpack.c.bf16 %v244_v4, %v243_v3  ;;  %v276_v7 = vld [vmem:[%s3097_s13 + $0x188] sm:$0xff]  ;;  %v246_v16 = vld [vmem:[%s3097_s13 + $0x98] sm:$0xff] }
  0x1e   : > { %v227_v8 = vld [vmem:[%s3097_s13] sm:$0xff]  ;;  %v228_v9 = vld [vmem:[%s3097_s13 + $0x8] sm:$0xff]  ;;  %v2673_v10 = vpack.c.bf16 %v276_v7, %v275_v5  ;;  %v277_v17 = vld [vmem:[%s3097_s13 + $0x190] sm:$0xff]  ;;  %v2631_v19 = vpack.c.bf16 %v246_v16, %v245_v14 }
  0x1f   : > { %v2628_v11 = vpack.c.bf16 %v228_v9, %v227_v8  ;;  %v259_v12 = vld [vmem:[%s3097_s13 + $0x100] sm:$0xff]  ;;  %v260_v13 = vld [vmem:[%s3097_s13 + $0x108] sm:$0xff]  ;;  %2627 = vmatprep.subr.msk.bf16.mxu0 %vm3101_vm1, %v2625_v6  ;;  %v278_v18 = vld [vmem:[%s3097_s13 + $0x198] sm:$0xff] }
  0x20   : > { %v2676_v15 = vpack.c.bf16 %v260_v13, %v259_v12  ;;  %2675 = vmatprep.subr.msk.bf16.mxu1 %vm3101_vm1, %v2673_v10  ;;  %v2679_v20 = vpack.c.bf16 %v278_v18, %v277_v17  ;;  %v229_v21 = vld [vmem:[%s3097_s13 + $0x10] sm:$0xff]  ;;  %v230_v22 = vld [vmem:[%s3097_s13 + $0x18] sm:$0xff]  ;;  %v247_v25 = vld [vmem:[%s3097_s13 + $0xa0] sm:$0xff] }
  0x21   : > { %2630 = vmatpush3.bf16.xpose.msk.msra.mxu0 %vm3101_vm1, %v2628_v11  ;;  %v261_v23 = vld [vmem:[%s3097_s13 + $0x110] sm:$0xff]  ;;  %v262_v24 = vld [vmem:[%s3097_s13 + $0x118] sm:$0xff]  ;;  %v248_v26 = vld [vmem:[%s3097_s13 + $0xa8] sm:$0xff]  ;;  %v2634_v29 = vpack.c.bf16 %v230_v22, %v229_v21 }
  0x22   : > { %2678 = vmatpush3.bf16.xpose.msk.msra.mxu1 %vm3101_vm1, %v2676_v15  ;;  %2633 = vmatprep.subr.msk.bf16.mxu0 %vm3101_vm1, %v2631_v19  ;;  %v279_v27 = vld [vmem:[%s3097_s13 + $0x1a0] sm:$0xff]  ;;  %v280_v28 = vld [vmem:[%s3097_s13 + $0x1a8] sm:$0xff]  ;;  %v2682_v30 = vpack.c.bf16 %v262_v24, %v261_v23  ;;  %v2637_v31 = vpack.c.bf16 %v248_v26, %v247_v25  ;;  %v249_v38 = vld [vmem:[%s3097_s13 + $0xb0] sm:$0xff] }
  0x23   : > { %2681 = vmatprep.subr.msk.bf16.mxu1 %vm3101_vm1, %v2679_v20  ;;  %v2685_v33 = vpack.c.bf16 %v280_v28, %v279_v27  ;;  %v231_v34 = vld [vmem:[%s3097_s13 + $0x20] sm:$0xff]  ;;  %v232_v35 = vld [vmem:[%s3097_s13 + $0x28] sm:$0xff]  ;;  %v250_v39 = vld [vmem:[%s3097_s13 + $0xb8] sm:$0xff] }
  0x24   : > { %v263_v36 = vld [vmem:[%s3097_s13 + $0x120] sm:$0xff]  ;;  %v264_v37 = vld [vmem:[%s3097_s13 + $0x128] sm:$0xff]  ;;  %v281_v40 = vld [vmem:[%s3097_s13 + $0x1b0] sm:$0xff]  ;;  %v2640_v42 = vpack.c.bf16 %v232_v35, %v231_v34  ;;  %v2643_v44 = vpack.c.bf16 %v250_v39, %v249_v38 }
  0x25   : > { %v282_v41 = vld [vmem:[%s3097_s13 + $0x1b8] sm:$0xff]  ;;  %v2688_v43 = vpack.c.bf16 %v264_v37, %v263_v36  ;;  %v233_v46 = vld [vmem:[%s3097_s13 + $0x30] sm:$0xff]  ;;  %v251_v50 = vld [vmem:[%s3097_s13 + $0xc0] sm:$0xff] }
  0x26   : > { %v2691_v45 = vpack.c.bf16 %v282_v41, %v281_v40  ;;  %v234_v47 = vld [vmem:[%s3097_s13 + $0x38] sm:$0xff]  ;;  %v265_v48 = vld [vmem:[%s3097_s13 + $0x130] sm:$0xff]  ;;  %v252_v51 = vld [vmem:[%s3097_s13 + $0xc8] sm:$0xff] }
  0x27   : > { %v266_v49 = vld [vmem:[%s3097_s13 + $0x138] sm:$0xff]  ;;  %v283_v52 = vld [vmem:[%s3097_s13 + $0x1c0] sm:$0xff]  ;;  %v284_v53 = vld [vmem:[%s3097_s13 + $0x1c8] sm:$0xff]  ;;  %v2646_v54 = vpack.c.bf16 %v234_v47, %v233_v46  ;;  %v2649_v56 = vpack.c.bf16 %v252_v51, %v251_v50 }
  0x28   : > { %v2694_v55 = vpack.c.bf16 %v266_v49, %v265_v48  ;;  %v2697_v57 = vpack.c.bf16 %v284_v53, %v283_v52  ;;  %v235_v58 = vld [vmem:[%s3097_s13 + $0x40] sm:$0xff]  ;;  %v236_v59 = vld [vmem:[%s3097_s13 + $0x48] sm:$0xff]  ;;  %v253_v62 = vld [vmem:[%s3097_s13 + $0xd0] sm:$0xff] }
  0x29   : > { %2636 = vmatpush3.bf16.xpose.msk.msra.mxu0 %vm3101_vm1, %v2634_v29  ;;  %v267_v60 = vld [vmem:[%s3097_s13 + $0x140] sm:$0xff]  ;;  %v268_v61 = vld [vmem:[%s3097_s13 + $0x148] sm:$0xff]  ;;  %v254_v63 = vld [vmem:[%s3097_s13 + $0xd8] sm:$0xff]  ;;  %v2652_v4 = vpack.c.bf16 %v236_v59, %v235_v58 }
  0x2a   : > { %2684 = vmatpush3.bf16.xpose.msk.msra.mxu1 %vm3101_vm1, %v2682_v30  ;;  %2639 = vmatprep.subr.msk.bf16.mxu0 %vm3101_vm1, %v2637_v31  ;;  %v285_v0 = vld [vmem:[%s3097_s13 + $0x1d0] sm:$0xff]  ;;  %v286_v3 = vld [vmem:[%s3097_s13 + $0x1d8] sm:$0xff]  ;;  %v2700_v5 = vpack.c.bf16 %v268_v61, %v267_v60  ;;  %v2655_v6 = vpack.c.bf16 %v254_v63, %v253_v62  ;;  %v255_v12 = vld [vmem:[%s3097_s13 + $0xe0] sm:$0xff] }
  0x2b   : > { %2687 = vmatprep.subr.msk.bf16.mxu1 %vm3101_vm1, %v2685_v33  ;;  %v2703_v7 = vpack.c.bf16 %v286_v3, %v285_v0  ;;  %v237_v8 = vld [vmem:[%s3097_s13 + $0x50] sm:$0xff]  ;;  %v238_v9 = vld [vmem:[%s3097_s13 + $0x58] sm:$0xff]  ;;  %v256_v13 = vld [vmem:[%s3097_s13 + $0xe8] sm:$0xff] }
  0x2c   : > { %v269_v10 = vld [vmem:[%s3097_s13 + $0x150] sm:$0xff]  ;;  %v270_v11 = vld [vmem:[%s3097_s13 + $0x158] sm:$0xff]  ;;  %v287_v14 = vld [vmem:[%s3097_s13 + $0x1e0] sm:$0xff]  ;;  %v2658_v16 = vpack.c.bf16 %v238_v9, %v237_v8  ;;  %v2661_v18 = vpack.c.bf16 %v256_v13, %v255_v12 }
  0x2d   : > { %v288_v15 = vld [vmem:[%s3097_s13 + $0x1e8] sm:$0xff]  ;;  %v2706_v17 = vpack.c.bf16 %v270_v11, %v269_v10  ;;  %v357_v20 = vld [vmem:[%s3568_s2] sm:$0xff]  ;;  %v257_v26 = vld [vmem:[%s3097_s13 + $0xf0] sm:$0xff] }
  0x2e   : > { %v2709_v19 = vpack.c.bf16 %v288_v15, %v287_v14  ;;  %361 = vperm.xlu0 %2932, %v357_v20   ;;  %v358_v21 = vld [vmem:[%s3568_s2 + $0x8] sm:$0x3]  ;;  %v239_v22 = vld [vmem:[%s3097_s13 + $0x60] sm:$0xff]  ;;  %v258_v27 = vld [vmem:[%s3097_s13 + $0xf8] sm:$0xff] }
  0x2f   : > { %v240_v23 = vld [vmem:[%s3097_s13 + $0x68] sm:$0xff]  ;;  %v271_v24 = vld [vmem:[%s3097_s13 + $0x160] sm:$0xff]  ;;  %v289_v28 = vld [vmem:[%s3097_s13 + $0x1f0] sm:$0xff]  ;;  %v2667_v33 = vpack.c.bf16 %v258_v27, %v257_v26 }
  0x30   : > { %v272_v25 = vld [vmem:[%s3097_s13 + $0x168] sm:$0xff]  ;;  %v290_v29 = vld [vmem:[%s3097_s13 + $0x1f8] sm:$0xff]  ;;  %v2664_v30 = vpack.c.bf16 %v240_v23, %v239_v22  ;;  %v2445_v31 = vld [vmem:[%s3568_s2 + $0x20] sm:$0xff] }
  0x31   : > { %2642 = vmatpush3.bf16.xpose.msk.msra.mxu0 %vm3101_vm1, %v2640_v42  ;;  %v2712_v32 = vpack.c.bf16 %v272_v25, %v271_v24  ;;  %v2715_v34 = vpack.c.bf16 %v290_v29, %v289_v28  ;;  %v1826_v35 = vld [vmem:[#allocation2] sm:$0x1]  ;;  %v241_v36 = vld [vmem:[%s3097_s13 + $0x70] sm:$0xff]  ;;  %v242_v37 = vld [vmem:[%s3097_s13 + $0x78] sm:$0xff] }
  0x32   : > { %2690 = vmatpush3.bf16.xpose.msk.msra.mxu1 %vm3101_vm1, %v2688_v43  ;;  %2645 = vmatprep.subr.msk.bf16.mxu0 %vm3101_vm1, %v2643_v44  ;;  %v273_v38 = vld [vmem:[%s3097_s13 + $0x170] sm:$0xff]  ;;  %v274_v39 = vld [vmem:[%s3097_s13 + $0x178] sm:$0xff]  ;;  %v307_v40 = vld [vmem:[%s3097_s13 + $0x280] sm:$0xff]  ;;  %v2670_v44 = vpack.c.bf16 %v242_v37, %v241_v36 }
  0x33   : > { %2693 = vmatprep.subr.msk.bf16.mxu1 %vm3101_vm1, %v2691_v45  ;;  %366 = vperm.xlu0 %2932, %v358_v21   ;;  %v308_v41 = vld [vmem:[%s3097_s13 + $0x288] sm:$0xff]  ;;  %v339_v42 = vld [vmem:[%s3097_s13 + $0x380] sm:$0xff]  ;;  %v2718_v45 = vpack.c.bf16 %v274_v39, %v273_v38  ;;  %v309_v52 = vld [vmem:[%s3097_s13 + $0x290] sm:$0xff] }
  0x34   : > { %v340_v43 = vld [vmem:[%s3097_s13 + $0x388] sm:$0xff]  ;;  %v2721_v46 = vpack.c.bf16 %v308_v41, %v307_v40  ;;  %v291_v48 = vld [vmem:[%s3097_s13 + $0x200] sm:$0xff]  ;;  %v310_v53 = vld [vmem:[%s3097_s13 + $0x298] sm:$0xff] }
  0x35   : > { %v2769_v47 = vpack.c.bf16 %v340_v43, %v339_v42  ;;  %v292_v49 = vld [vmem:[%s3097_s13 + $0x208] sm:$0xff]  ;;  %v323_v50 = vld [vmem:[%s3097_s13 + $0x300] sm:$0xff]  ;;  %v2727_v59 = vpack.c.bf16 %v310_v53, %v309_v52  ;;  %v293_v61 = vld [vmem:[%s3097_s13 + $0x210] sm:$0xff] }
  0x36   : > { %v324_v51 = vld [vmem:[%s3097_s13 + $0x308] sm:$0xff]  ;;  %v294_v62 = vld [vmem:[%s3097_s13 + $0x218] sm:$0xff]  ;;  %v325_v63 = vld [vmem:[%s3097_s13 + $0x310] sm:$0xff] }
  0x37   : > { %1463 = vperm.xlu0 %2932, %v2445_v31   ;;  %v3261_v58 = vld [vmem:[%s3567_s1 + $0x8] sm:$0x3]  ;;  %v326_v0 = vld [vmem:[%s3097_s13 + $0x318] sm:$0xff]  ;;  %v311_v3 = vld [vmem:[%s3097_s13 + $0x2a0] sm:$0xff] }
  0x38   : > { %v2778_v8 = vpack.c.bf16 %v326_v0, %v325_v63  ;;  %v295_v11 = vld [vmem:[%s3097_s13 + $0x220] sm:$0xff]  ;;  %v296_v12 = vld [vmem:[%s3097_s13 + $0x228] sm:$0xff]  ;;  %v313_v15 = vld [vmem:[%s3097_s13 + $0x2b0] sm:$0xff] }
  0x39   : > { %2648 = vmatpush3.bf16.xpose.msk.msra.mxu0 %vm3101_vm1, %v2646_v54  ;;  %v2724_v54 = vpack.c.bf16 %v292_v49, %v291_v48  ;;  %v327_v13 = vld [vmem:[%s3097_s13 + $0x320] sm:$0xff]  ;;  %v328_v14 = vld [vmem:[%s3097_s13 + $0x328] sm:$0xff]  ;;  %v297_v23 = vld [vmem:[%s3097_s13 + $0x230] sm:$0xff] }
  0x3a   : > { %2696 = vmatpush3.bf16.xpose.msk.msra.mxu1 %vm3101_vm1, %v2694_v55  ;;  %2651 = vmatprep.subr.msk.bf16.mxu0 %vm3101_vm1, %v2649_v56  ;;  %v341_v55 = vld [vmem:[%s3097_s13 + $0x390] sm:$0xff]  ;;  %v342_v56 = vld [vmem:[%s3097_s13 + $0x398] sm:$0xff]  ;;  %v2784_v20 = vpack.c.bf16 %v328_v14, %v327_v13  ;;  %v315_v27 = vld [vmem:[%s3097_s13 + $0x2c0] sm:$0xff] }
  0x3b   : > { %2699 = vmatprep.subr.msk.bf16.mxu1 %vm3101_vm1, %v2697_v57  ;;  %1829 = vperm.xlu0 %2932, %v1826_v35   ;;  %v2772_v57 = vpack.c.bf16 %v324_v51, %v323_v50  ;;  %v2775_v60 = vpack.c.bf16 %v342_v56, %v341_v55  ;;  %v298_v24 = vld [vmem:[%s3097_s13 + $0x238] sm:$0xff]  ;;  %v329_v25 = vld [vmem:[%s3097_s13 + $0x330] sm:$0xff]  ;;  %v316_v28 = vld [vmem:[%s3097_s13 + $0x2c8] sm:$0xff] }
  0x3c   : > { %v330_v26 = vld [vmem:[%s3097_s13 + $0x338] sm:$0xff]  ;;  %v347_v29 = vld [vmem:[%s3097_s13 + $0x3c0] sm:$0xff]  ;;  %v2742_v31 = vpack.c.bf16 %v298_v24, %v297_v23  ;;  %v300_v36 = vld [vmem:[%s3097_s13 + $0x248] sm:$0xff] }
  0x3d   : > { %v299_v35 = vld [vmem:[%s3097_s13 + $0x240] sm:$0xff]  ;;  %v332_v38 = vld [vmem:[%s3097_s13 + $0x348] sm:$0xff]  ;;  %v317_v39 = vld [vmem:[%s3097_s13 + $0x2d0] sm:$0xff] }
  0x3e   : > { %v331_v37 = vld [vmem:[%s3097_s13 + $0x340] sm:$0xff]  ;;  %v318_v40 = vld [vmem:[%s3097_s13 + $0x2d8] sm:$0xff]  ;;  %v349_v41 = vld [vmem:[%s3097_s13 + $0x3d0] sm:$0xff]  ;;  %v2748_v43 = vpack.c.bf16 %v300_v36, %v299_v35 }
  0x3f   : > { %v350_v42 = vld [vmem:[%s3097_s13 + $0x3d8] sm:$0xff]  ;;  %v333_v49 = vld [vmem:[%s3097_s13 + $0x350] sm:$0xff]  ;;  %v319_v51 = vld [vmem:[%s3097_s13 + $0x2e0] sm:$0xff] }
  0x40   : > { %v302_v48 = vld [vmem:[%s3097_s13 + $0x258] sm:$0xff]  ;;  %v320_v52 = vld [vmem:[%s3097_s13 + $0x2e8] sm:$0xff]  ;;  %v351_v53 = vld [vmem:[%s3097_s13 + $0x3e0] sm:$0xff] }
  0x41   : > { %2654 = vmatpush3.bf16.xpose.msk.msra.mxu0 %vm3101_vm1, %v2652_v4  ;;  %v312_v4 = vld [vmem:[%s3097_s13 + $0x2a8] sm:$0xff]  ;;  %v334_v50 = vld [vmem:[%s3097_s13 + $0x358] sm:$0xff]  ;;  %v321_v0 = vld [vmem:[%s3097_s13 + $0x2f0] sm:$0xff] }
  0x42   : > { %2702 = vmatpush3.bf16.xpose.msk.msra.mxu1 %vm3101_vm1, %v2700_v5  ;;  %2657 = vmatprep.subr.msk.bf16.mxu0 %vm3101_vm1, %v2655_v6  ;;  %v343_v5 = vld [vmem:[%s3097_s13 + $0x3a0] sm:$0xff]  ;;  %v344_v6 = vld [vmem:[%s3097_s13 + $0x3a8] sm:$0xff]  ;;  %v2733_v9 = vpack.c.bf16 %v312_v4, %v311_v3  ;;  %v2802_v56 = vpack.c.bf16 %v334_v50, %v333_v49  ;;  %v322_v3 = vld [vmem:[%s3097_s13 + $0x2f8] sm:$0xff] }
  0x43   : > { %2705 = vmatprep.subr.msk.bf16.mxu1 %vm3101_vm1, %v2703_v7  ;;  %v2730_v7 = vpack.c.bf16 %v294_v62, %v293_v61  ;;  %v2781_v10 = vpack.c.bf16 %v344_v6, %v343_v5  ;;  %v304_v61 = vld [vmem:[%s3097_s13 + $0x268] sm:$0xff]  ;;  %v335_v62 = vld [vmem:[%s3097_s13 + $0x360] sm:$0xff]  ;;  %v353_v4 = vld [vmem:[%s3097_s13 + $0x3f0] sm:$0xff] }
  0x44   : > { %v336_v63 = vld [vmem:[%s3097_s13 + $0x368] sm:$0xff]  ;;  %v354_v5 = vld [vmem:[%s3097_s13 + $0x3f8] sm:$0xff] }
  0x45   : > { %v338_v13 = vld [vmem:[%s3097_s13 + $0x378] sm:$0xff] }
  0x46   : > { %v2424_v49 = vld [vmem:[%s3567_s1 + $0x18] sm:$0x3] }
  0x49   : > { %2660 = vmatpush3.bf16.xpose.msk.msra.mxu0 %vm3101_vm1, %v2658_v16  ;;  %v314_v16 = vld [vmem:[%s3097_s13 + $0x2b8] sm:$0xff] }
  0x4a   : > { %2708 = vmatpush3.bf16.xpose.msk.msra.mxu1 %vm3101_vm1, %v2706_v17  ;;  %2663 = vmatprep.subr.msk.bf16.mxu0 %vm3101_vm1, %v2661_v18  ;;  %v345_v17 = vld [vmem:[%s3097_s13 + $0x3b0] sm:$0xff]  ;;  %v346_v18 = vld [vmem:[%s3097_s13 + $0x3b8] sm:$0xff]  ;;  %v2739_v21 = vpack.c.bf16 %v314_v16, %v313_v15 }
  0x4b   : > { %2711 = vmatprep.subr.msk.bf16.mxu1 %vm3101_vm1, %v2709_v19  ;;  %v2736_v19 = vpack.c.bf16 %v296_v12, %v295_v11  ;;  %v2787_v22 = vpack.c.bf16 %v346_v18, %v345_v17  ;;  %v306_v11 = vld [vmem:[%s3097_s13 + $0x278] sm:$0xff]  ;;  %v337_v12 = vld [vmem:[%s3097_s13 + $0x370] sm:$0xff]  ;;  %v2446_v17 = vld [vmem:[%s3568_s2 + $0x28] sm:$0x3] }
  0x4c   : > { %v2814_v15 = vpack.c.bf16 %v338_v13, %v337_v12  ;;  %v2426_v16 = vld [vmem:[%s3568_s2 + $0x18] sm:$0x3] }
  0x51   : > { %2666 = vmatpush3.bf16.xpose.msk.msra.mxu0 %vm3101_vm1, %v2664_v30  ;;  %v348_v30 = vld [vmem:[%s3097_s13 + $0x3c8] sm:$0xff] }
  0x52   : > { %2714 = vmatpush3.bf16.xpose.msk.msra.mxu1 %vm3101_vm1, %v2712_v32  ;;  %2669 = vmatprep.subr.msk.bf16.mxu0 %vm3101_vm1, %v2667_v33  ;;  %v2790_v32 = vpack.c.bf16 %v330_v26, %v329_v25  ;;  %v2745_v33 = vpack.c.bf16 %v316_v28, %v315_v27 }
  0x53   : > { %2717 = vmatprep.subr.msk.bf16.mxu1 %vm3101_vm1, %v2715_v34  ;;  %v2793_v34 = vpack.c.bf16 %v348_v30, %v347_v29 }
  0x59   : > { %2672 = vmatpush3.bf16.xpose.msk.msra.mxu0 %vm3101_vm1, %v2670_v44  ;;  %v2796_v44 = vpack.c.bf16 %v332_v38, %v331_v37 }
  0x5a   : > { %2720 = vmatpush3.bf16.xpose.msk.msra.mxu1 %vm3101_vm1, %v2718_v45  ;;  %2723 = vmatprep.subr.msk.bf16.mxu0 %vm3101_vm1, %v2721_v46  ;;  %v2751_v45 = vpack.c.bf16 %v318_v40, %v317_v39  ;;  %v2799_v46 = vpack.c.bf16 %v350_v42, %v349_v41 }
  0x5b   : > { %2771 = vmatprep.subr.msk.bf16.mxu1 %vm3101_vm1, %v2769_v47  ;;  %v301_v47 = vld [vmem:[%s3097_s13 + $0x250] sm:$0xff] }
  0x5c   : > { %v2754_v55 = vpack.c.bf16 %v302_v48, %v301_v47  ;;  %v2423_v48 = vld [vmem:[%s3567_s1 + $0x10] sm:$0xff] }
  0x60   : > { %2514 = vmatmul.mubr.msk.f32.vlgmr.msra.gmra.mrb[0].mxu0 %vm369_vm0, %v3086_v1 }
  0x61   : > { %2550 = vmatmul.mubr.msk.f32.vlgmr.msra.gmra.mrb[0].mxu1 %vm369_vm0, %v3086_v1  ;;  %2726 = vmatpush3.bf16.xpose.msk.msra.mxu0 %vm3101_vm1, %v2724_v54  ;;  %v352_v54 = vld [vmem:[%s3097_s13 + $0x3e8] sm:$0xff] }
  0x62   : > { %2774 = vmatpush3.bf16.xpose.msk.msra.mxu1 %vm3101_vm1, %v2772_v57  ;;  %2515 = vmatprep.mubr.msk.f32.mxu0 %vm369_vm0, %v3261_v58  ;;  %v2757_v57 = vpack.c.bf16 %v320_v52, %v319_v51 }
  0x63   : > { %2551 = vmatprep.mubr.msk.f32.mxu1 %vm369_vm0, %v3261_v58  ;;  %2729 = vmatprep.subr.msk.bf16.mxu0 %vm3101_vm1, %v2727_v59  ;;  %v2805_v59 = vpack.c.bf16 %v352_v54, %v351_v53 }
  0x64   : > { %2516 = vmatmul.mubr.msk.f32.gmra.mrb[2].mxu0 %vm369_vm0, %v3261_v58  ;;  %2777 = vmatprep.subr.msk.bf16.mxu1 %vm3101_vm1, %v2775_v60  ;;  %v303_v60 = vld [vmem:[%s3097_s13 + $0x260] sm:$0xff] }
  0x65   : > { %2552 = vmatmul.mubr.msk.f32.gmra.mrb[2].mxu1 %vm369_vm0, %v3261_v58  ;;  %2585 = vmatprep.mubr.msk.f32.mxu0 %vm369_vm0, %v3086_v1  ;;  %v2760_v6 = vpack.c.bf16 %v304_v61, %v303_v60 }
  0x66   : > { %2621 = vmatprep.mubr.msk.f32.mxu1 %vm369_vm0, %v3086_v1 }
  0x69   : > { %2732 = vmatpush3.bf16.xpose.msk.msra.mxu0 %vm3101_vm1, %v2730_v7  ;;  %v2808_v7 = vpack.c.bf16 %v336_v63, %v335_v62 }
  0x6a   : > { %2780 = vmatpush3.bf16.xpose.msk.msra.mxu1 %vm3101_vm1, %v2778_v8  ;;  %2735 = vmatprep.subr.msk.bf16.mxu0 %vm3101_vm1, %v2733_v9  ;;  %v2763_v8 = vpack.c.bf16 %v322_v3, %v321_v0  ;;  %v2811_v9 = vpack.c.bf16 %v354_v5, %v353_v4 }
  0x6b   : > { %2783 = vmatprep.subr.msk.bf16.mxu1 %vm3101_vm1, %v2781_v10  ;;  %v305_v10 = vld [vmem:[%s3097_s13 + $0x270] sm:$0xff]  ;;  %s3002_s13 = smov [#allocation3]  }
  0x6c   : > { %v2766_v14 = vpack.c.bf16 %v306_v11, %v305_v10  ;;  %s2938_s14 = sshll.u32 %s3002_s13, 4  ;;  %s2939_s14 = int_to_ptr.vmem [resolvable:$false] %s2938_s14 }
  0x6d   : > { %s2940_s15 = scalar_lea.vmem %s2939_s14, 256  ;;  %p2941_p0 = scmp.lt.s32.totalorder %s3526_s7, %s2939_s14 }
  0x6e   : > { %p2942_p1 = scmp.lt.s32.totalorder %s2940_s15, %s2934_s12 }
  0x70   : > { %p2943_p2 = por %p2942_p1, %p2941_p0 }
  0x71   : > { %2738 = vmatpush3.bf16.xpose.msk.msra.mxu0 %vm3101_vm1, %v2736_v19 }
  0x72   : > { %2786 = vmatpush3.bf16.xpose.msk.msra.mxu1 %vm3101_vm1, %v2784_v20  ;;  %2741 = vmatprep.subr.msk.bf16.mxu0 %vm3101_vm1, %v2739_v21  ;;  %p2944_p3 = pnand %p2943_p2, %p2937_p13 }
  0x73   : > { %2789 = vmatprep.subr.msk.bf16.mxu1 %vm3101_vm1, %v2787_v22 }
  0x79   : > { %2744 = vmatpush3.bf16.xpose.msk.msra.mxu0 %vm3101_vm1, %v2742_v31 }
  0x7a   : > { %2792 = vmatpush3.bf16.xpose.msk.msra.mxu1 %vm3101_vm1, %v2790_v32  ;;  %2747 = vmatprep.subr.msk.bf16.mxu0 %vm3101_vm1, %v2745_v33 }
  0x7b   : > { %2795 = vmatprep.subr.msk.bf16.mxu1 %vm3101_vm1, %v2793_v34 }
  0x81   : > { %2750 = vmatpush3.bf16.xpose.msk.msra.mxu0 %vm3101_vm1, %v2748_v43 }
  0x82   : > { %2798 = vmatpush3.bf16.xpose.msk.msra.mxu1 %vm3101_vm1, %v2796_v44  ;;  %2753 = vmatprep.subr.msk.bf16.mxu0 %vm3101_vm1, %v2751_v45 }
  0x83   : > { %2801 = vmatprep.subr.msk.bf16.mxu1 %vm3101_vm1, %v2799_v46 }
  0x89   : > { %2756 = vmatpush3.bf16.xpose.msk.msra.mxu0 %vm3101_vm1, %v2754_v55 }
  0x8a   : > { %2804 = vmatpush3.bf16.xpose.msk.msra.mxu1 %vm3101_vm1, %v2802_v56  ;;  %2759 = vmatprep.subr.msk.bf16.mxu0 %vm3101_vm1, %v2757_v57 }
  0x8b   : > { %2807 = vmatprep.subr.msk.bf16.mxu1 %vm3101_vm1, %v2805_v59 }
  0x91   : > { %2762 = vmatpush3.bf16.xpose.msk.msra.mxu0 %vm3101_vm1, %v2760_v6 }
  0x92   : > { %2810 = vmatpush3.bf16.xpose.msk.msra.mxu1 %vm3101_vm1, %v2808_v7  ;;  %2765 = vmatprep.subr.msk.bf16.mxu0 %vm3101_vm1, %v2763_v8 }
  0x93   : > { %2813 = vmatprep.subr.msk.bf16.mxu1 %vm3101_vm1, %v2811_v9 }
  0x99   : > { %2768 = vmatpush3.bf16.xpose.msk.msra.mxu0 %vm3101_vm1, %v2766_v14 }
  0x9a   : > { %2816 = vmatpush3.bf16.xpose.msk.msra.mxu1 %vm3101_vm1, %v2814_v15 }
  0xa0   : > { %2586 = vmatmul.mubr.msk.f32.vlgmr.msra.gmra.mrb[4].mxu0 %vm369_vm0, %v3086_v1 }
  0xa1   : > { %2622 = vmatmul.mubr.msk.f32.vlgmr.msra.gmra.mrb[4].mxu1 %vm369_vm0, %v3086_v1  ;;  %2587 = vmatprep.mubr.msk.f32.mxu0 %vm369_vm0, %v3261_v58  ;;  %v2425_v1 = vld [vmem:[%s3568_s2 + $0x10] sm:$0xff] }
  0xa2   : > { %2623 = vmatprep.mubr.msk.f32.mxu1 %vm369_vm0, %v3261_v58  ;;  %1092 = vperm.xlu1 %2933, %v2425_v1  }
  0xa4   : > { %2588 = vmatmul.mubr.msk.f32.gmra.mrb[6].mxu0 %vm369_vm0, %v3261_v58 }
  0xa5   : > { %2624 = vmatmul.mubr.msk.f32.gmra.mrb[6].mxu1 %vm369_vm0, %v3261_v58  ;;  %1195 = vmatprep.mubr.f32.mxu0 %v2999_v2 }
  0xa6   : > { %1272 = vmatprep.mubr.f32.mxu1 %v2999_v2  ;;  %1097 = vperm.xlu1 %2933, %v2426_v16  }
  0xaa   : > { %1468 = vperm.xlu1 %2933, %v2446_v17  }
  0xad   : > { %v362_v58 = vpop.permute.xlu0 %361 }
  0xb2   : > { %v367_v22 = vpop.permute.xlu0 %366 }
 0x121   : > { %v1093_v16 = vpop.permute.xlu1 %1092 }
 0x133   : > { %v826_v18 = vpop.f32.mrb[0].mxu0 }
 0x134   : > { %v903_v19 = vpop.f32.mrb[0].mxu1  ;;  %v828_v20 = vpop.f32.mrb[1].mxu0  ;;  %v827_v23 = vadd.f32 %v826_v18, %v362_v58 }
 0x135   : > { %v905_v21 = vpop.f32.mrb[1].mxu1  ;;  %v904_v24 = vadd.f32 %v903_v19, %v362_v58  ;;  %v829_v25 = vadd.f32 %v828_v20, %v362_v58 }
 0x136   : > { %v906_v27 = vadd.f32 %v905_v21, %v362_v58  ;;  %v1068_v34 = vmax.f32 %v827_v23, 0.0  ;;  %v1098_v23 = vpop.permute.xlu1 %1097 }
 0x137   : > { %v832_v26 = vpop.f32.mrb[2].mxu0  ;;  %v1070_v37 = vmax.f32 %v904_v24, 0.0  ;;  %v1069_v38 = vmax.f32 %v829_v25, 0.0 }
 0x138   : > { %v833_v28 = vadd.f32 %v832_v26, %v367_v22  ;;  %v909_v29 = vpop.f32.mrb[2].mxu1  ;;  %v834_v30 = vpop.f32.mrb[3].mxu0  ;;  %v1071_v41 = vmax.f32 %v906_v27, 0.0 }
 0x139   : > { %v910_v31 = vadd.f32 %v909_v29, %v367_v22  ;;  %v835_v32 = vadd.f32 %v834_v30, %v367_v22  ;;  %v911_v33 = vpop.f32.mrb[3].mxu1 }
 0x13a   : > { %v1076_v35 = vmax.f32 %v833_v28, 0.0  ;;  %v912_v36 = vadd.f32 %v911_v33, %v367_v22 }
 0x13b   : > { %v1078_v39 = vmax.f32 %v910_v31, 0.0  ;;  %v1077_v40 = vmax.f32 %v835_v32, 0.0 }
 0x13c   : > { %v2820_v42 = vpack.c.bf16 %v1076_v35, %v1068_v34  ;;  %v1079_v43 = vmax.f32 %v912_v36, 0.0 }
 0x13d   : > { %v2826_v45 = vpack.c.bf16 %v1078_v39, %v1070_v37  ;;  %v2817_v46 = vpack.c.bf16 %v1077_v40, %v1069_v38 }
 0x13e   : > { %v2823_v47 = vpack.c.bf16 %v1079_v43, %v1071_v41 }
 0x13f   : > { %2819 = vmatprep.subr.msk.bf16.mxu0 %vm3414_vm4, %v2817_v46  ;;  %v2443_v46 = vld [vmem:[%s3567_s1 + $0x20] sm:$0xff] }
 0x140   : > { %2825 = vmatprep.subr.msk.bf16.mxu1 %vm3414_vm4, %v2823_v47  ;;  %2822 = vmatpush1.bf16.msk.msra.mxu0 %vm3414_vm4, %v2820_v42  ;;  %v2444_v47 = vld [vmem:[%s3567_s1 + $0x28] sm:$0x3] }
 0x141   : > { %2828 = vmatpush1.bf16.msk.msra.mxu1 %vm3414_vm4, %v2826_v45 }
 0x143   : > { %2429 = vmatmul.mubr.msk.f32.vlgmr.msra.gmra.mrb[8].mxu0 %vm369_vm0, %v2423_v48 }
 0x144   : > { %2433 = vmatmul.mubr.msk.f32.vlgmr.msra.gmra.mrb[8].mxu1 %vm369_vm0, %v2423_v48  ;;  %1201 = vmatprep.mubr.f32.mxu0 %v2999_v2 }
 0x145   : > { %1278 = vmatprep.mubr.f32.mxu1 %v2999_v2 }
 0x147   : > { %2430 = vmatmul.mubr.msk.f32.gmra.mrb[10].mxu0 %vm369_vm0, %v2424_v49 }
 0x148   : > { %2434 = vmatmul.mubr.msk.f32.gmra.mrb[10].mxu1 %vm369_vm0, %v2424_v49  ;;  %1349 = vmatprep.mubr.f32.mxu0 %v2999_v2 }
 0x149   : > { %1426 = vmatprep.mubr.f32.mxu1 %v2999_v2 }
 0x173   : > { %v980_v50 = vpop.f32.mrb[4].mxu0 }
 0x174   : > { %v1057_v51 = vpop.f32.mrb[4].mxu1  ;;  %v982_v52 = vpop.f32.mrb[5].mxu0  ;;  %v981_v54 = vadd.f32 %v980_v50, %v362_v58 }
 0x175   : > { %v1059_v53 = vpop.f32.mrb[5].mxu1  ;;  %v1058_v55 = vadd.f32 %v1057_v51, %v362_v58  ;;  %v983_v56 = vadd.f32 %v982_v52, %v362_v58 }
 0x176   : > { %v1060_v59 = vadd.f32 %v1059_v53, %v362_v58  ;;  %v1072_v4 = vmax.f32 %v981_v54, 0.0 }
 0x177   : > { %v986_v57 = vpop.f32.mrb[6].mxu0  ;;  %v1074_v7 = vmax.f32 %v1058_v55, 0.0  ;;  %v1073_v8 = vmax.f32 %v983_v56, 0.0 }
 0x178   : > { %v987_v60 = vadd.f32 %v986_v57, %v367_v22  ;;  %v1063_v61 = vpop.f32.mrb[6].mxu1  ;;  %v988_v62 = vpop.f32.mrb[7].mxu0  ;;  %v1075_v11 = vmax.f32 %v1060_v59, 0.0 }
 0x179   : > { %v1064_v63 = vadd.f32 %v1063_v61, %v367_v22  ;;  %v989_v0 = vadd.f32 %v988_v62, %v367_v22  ;;  %v1065_v3 = vpop.f32.mrb[7].mxu1 }
 0x17a   : > { %v1080_v5 = vmax.f32 %v987_v60, 0.0  ;;  %v1066_v6 = vadd.f32 %v1065_v3, %v367_v22 }
 0x17b   : > { %v1082_v9 = vmax.f32 %v1064_v63, 0.0  ;;  %v1081_v10 = vmax.f32 %v989_v0, 0.0 }
 0x17c   : > { %v2832_v12 = vpack.c.bf16 %v1080_v5, %v1072_v4  ;;  %v1083_v13 = vmax.f32 %v1066_v6, 0.0 }
 0x17d   : > { %v2838_v14 = vpack.c.bf16 %v1082_v9, %v1074_v7  ;;  %v2829_v15 = vpack.c.bf16 %v1081_v10, %v1073_v8 }
 0x17e   : > { %v2835_v1 = vpack.c.bf16 %v1083_v13, %v1075_v11 }
 0x17f   : > { %2831 = vmatprep.subr.msk.bf16.mxu0 %vm3414_vm4, %v2829_v15 }
 0x180   : > { %2837 = vmatprep.subr.msk.bf16.mxu1 %vm3414_vm4, %v2835_v1  ;;  %2834 = vmatpush1.bf16.msk.msra.mxu0 %vm3414_vm4, %v2832_v12 }
 0x181   : > { %2840 = vmatpush1.bf16.msk.msra.mxu1 %vm3414_vm4, %v2838_v14 }
 0x183   : > { %2437 = vmatmul.mubr.msk.f32.vlgmr.msra.gmra.mrb[12].mxu0 %vm369_vm0, %v2423_v48 }
 0x184   : > { %2441 = vmatmul.mubr.msk.f32.vlgmr.msra.gmra.mrb[12].mxu1 %vm369_vm0, %v2423_v48  ;;  %1355 = vmatprep.mubr.f32.mxu0 %v2999_v2 }
 0x185   : > { %1432 = vmatprep.mubr.f32.mxu1 %v2999_v2 }
 0x187   : > { %2438 = vmatmul.mubr.msk.f32.gmra.mrb[14].mxu0 %vm369_vm0, %v2424_v49 }
 0x188   : > { %2442 = vmatmul.mubr.msk.f32.gmra.mrb[14].mxu1 %vm369_vm0, %v2424_v49  ;;  %1565 = vmatprep.mubr.f32.mxu0 %v2999_v2 }
 0x189   : > { %1642 = vmatprep.mubr.f32.mxu1 %v2999_v2 }
 0x216   : > { %v1197_v17 = vpop.f32.mrb[8].mxu0 }
 0x217   : > { %v1198_v58 = vadd.f32 %v1197_v17, %v1093_v16  ;;  %v1274_v18 = vpop.f32.mrb[8].mxu1  ;;  %v1199_v19 = vpop.f32.mrb[9].mxu0 }
 0x218   : > { %v1275_v20 = vadd.f32 %v1274_v18, %v1093_v16  ;;  %v1200_v21 = vadd.f32 %v1199_v19, %v1093_v16  ;;  %v1276_v22 = vpop.f32.mrb[9].mxu1  ;;  %v1464_v17 = vpop.permute.xlu0 %1463 }
 0x219   : > { %v1277_v24 = vadd.f32 %v1276_v22, %v1093_v16  ;;  %v1439_v26 = vmax.f32 %v1198_v58, 0.0  ;;  %v1469_v19 = vpop.permute.xlu1 %1468 }
 0x21a   : > { %v1203_v25 = vpop.f32.mrb[10].mxu0  ;;  %v1441_v30 = vmax.f32 %v1275_v20, 0.0  ;;  %v1440_v31 = vmax.f32 %v1200_v21, 0.0 }
 0x21b   : > { %v1280_v27 = vpop.f32.mrb[10].mxu1  ;;  %v1205_v28 = vpop.f32.mrb[11].mxu0  ;;  %v1204_v29 = vadd.f32 %v1203_v25, %v1098_v23  ;;  %v1442_v35 = vmax.f32 %v1277_v24, 0.0 }
 0x21c   : > { %v1206_v32 = vadd.f32 %v1205_v28, %v1098_v23  ;;  %v1282_v33 = vpop.f32.mrb[11].mxu1  ;;  %v1281_v34 = vadd.f32 %v1280_v27, %v1098_v23 }
 0x21d   : > { %v1283_v36 = vadd.f32 %v1282_v33, %v1098_v23  ;;  %v1447_v37 = vmax.f32 %v1204_v29, 0.0 }
 0x21e   : > { %v1448_v38 = vmax.f32 %v1206_v32, 0.0  ;;  %v1449_v39 = vmax.f32 %v1281_v34, 0.0 }
 0x21f   : > { %v1450_v40 = vmax.f32 %v1283_v36, 0.0  ;;  %v2844_v41 = vpack.c.bf16 %v1447_v37, %v1439_v26 }
 0x220   : > { %v2841_v42 = vpack.c.bf16 %v1448_v38, %v1440_v31  ;;  %v2850_v43 = vpack.c.bf16 %v1449_v39, %v1441_v30 }
 0x221   : > { %v2847_v45 = vpack.c.bf16 %v1450_v40, %v1442_v35 }
 0x222   : > { %2843 = vmatprep.subr.msk.bf16.mxu0 %vm3414_vm4, %v2841_v42 }
 0x223   : > { %2849 = vmatprep.subr.msk.bf16.mxu1 %vm3414_vm4, %v2847_v45  ;;  %2846 = vmatpush1.bf16.msk.msra.mxu0 %vm3414_vm4, %v2844_v41 }
 0x224   : > { %2852 = vmatpush1.bf16.msk.msra.mxu1 %vm3414_vm4, %v2850_v43  ;;  %v1825_v43 = vld [vmem:[%s3569_s3] sm:$0x1] }
 0x226   : > { %2449 = vmatmul.mubr.msk.f32.vlgmr.msra.gmra.mrb[16].mxu0 %vm369_vm0, %v2443_v46 }
 0x227   : > { %2453 = vmatmul.mubr.msk.f32.vlgmr.msra.gmra.mrb[16].mxu1 %vm369_vm0, %v2443_v46  ;;  %1571 = vmatprep.mubr.f32.mxu0 %v2999_v2 }
 0x228   : > { %1648 = vmatprep.mubr.f32.mxu1 %v2999_v2 }
 0x22a   : > { %2450 = vmatmul.mubr.msk.f32.gmra.mrb[18].mxu0 %vm369_vm0, %v2444_v47 }
 0x22b   : > { %2454 = vmatmul.mubr.msk.f32.gmra.mrb[18].mxu1 %vm369_vm0, %v2444_v47  ;;  %1719 = vmatprep.mubr.f32.mxu0 %v2999_v2 }
 0x22c   : > { %1796 = vmatprep.mubr.f32.mxu1 %v2999_v2 }
 0x256   : > { %v1351_v48 = vpop.f32.mrb[12].mxu0 }
 0x257   : > { %v1428_v49 = vpop.f32.mrb[12].mxu1  ;;  %v1353_v50 = vpop.f32.mrb[13].mxu0  ;;  %v1352_v52 = vadd.f32 %v1351_v48, %v1093_v16 }
 0x258   : > { %v1430_v51 = vpop.f32.mrb[13].mxu1  ;;  %v1429_v53 = vadd.f32 %v1428_v49, %v1093_v16  ;;  %v1354_v54 = vadd.f32 %v1353_v50, %v1093_v16 }
 0x259   : > { %v1431_v56 = vadd.f32 %v1430_v51, %v1093_v16  ;;  %v1443_v0 = vmax.f32 %v1352_v52, 0.0 }
 0x25a   : > { %v1357_v55 = vpop.f32.mrb[14].mxu0  ;;  %v1445_v5 = vmax.f32 %v1429_v53, 0.0  ;;  %v1444_v6 = vmax.f32 %v1354_v54, 0.0 }
 0x25b   : > { %v1358_v57 = vadd.f32 %v1357_v55, %v1098_v23  ;;  %v1434_v59 = vpop.f32.mrb[14].mxu1  ;;  %v1359_v60 = vpop.f32.mrb[15].mxu0  ;;  %v1446_v9 = vmax.f32 %v1431_v56, 0.0 }
 0x25c   : > { %v1435_v61 = vadd.f32 %v1434_v59, %v1098_v23  ;;  %v1360_v62 = vadd.f32 %v1359_v60, %v1098_v23  ;;  %v1436_v63 = vpop.f32.mrb[15].mxu1 }
 0x25d   : > { %v1451_v3 = vmax.f32 %v1358_v57, 0.0  ;;  %v1437_v4 = vadd.f32 %v1436_v63, %v1098_v23 }
 0x25e   : > { %v1453_v7 = vmax.f32 %v1435_v61, 0.0  ;;  %v1452_v8 = vmax.f32 %v1360_v62, 0.0 }
 0x25f   : > { %v2856_v10 = vpack.c.bf16 %v1451_v3, %v1443_v0  ;;  %v1454_v11 = vmax.f32 %v1437_v4, 0.0 }
 0x260   : > { %v2862_v12 = vpack.c.bf16 %v1453_v7, %v1445_v5  ;;  %v2853_v13 = vpack.c.bf16 %v1452_v8, %v1444_v6 }
 0x261   : > { %v2859_v14 = vpack.c.bf16 %v1454_v11, %v1446_v9  ;;  %v1832_v11 = vlaneseq }
 0x262   : > { %2855 = vmatprep.subr.msk.bf16.mxu0 %vm3414_vm4, %v2853_v13  ;;  %v3001_v13 = vmov 1966171168  }
 0x263   : > { %2861 = vmatprep.subr.msk.bf16.mxu1 %vm3414_vm4, %v2859_v14  ;;  %2858 = vmatpush1.bf16.msk.msra.mxu0 %vm3414_vm4, %v2856_v10  ;;  %v2160_v14 = vunpack.c.l.s4 %v3001_v13 }
 0x264   : > { %2864 = vmatpush1.bf16.msk.msra.mxu1 %vm3414_vm4, %v2862_v12  ;;  %v1833_v12 = vshrl.u32 %v1832_v11, 7 }
 0x266   : > { %2457 = vmatmul.mubr.msk.f32.vlgmr.msra.gmra.mrb[20].mxu0 %vm369_vm0, %v2443_v46 }
 0x267   : > { %2461 = vmatmul.mubr.msk.f32.vlgmr.msra.gmra.mrb[20].mxu1 %vm369_vm0, %v2443_v46  ;;  %1725 = vmatprep.mubr.f32.mxu0 %v2999_v2 }
 0x268   : > { %1802 = vmatprep.mubr.f32.mxu1 %v2999_v2 }
 0x26a   : > { %2458 = vmatmul.mubr.msk.f32.gmra.mrb[22].mxu0 %vm369_vm0, %v2444_v47 }
 0x26b   : > { %2462 = vmatmul.mubr.msk.f32.gmra.mrb[22].mxu1 %vm369_vm0, %v2444_v47  ;;  %1927 = vmatprep.mubr.f32.mxu0 %v2999_v2 }
 0x26c   : > { %1998 = vmatprep.mubr.f32.mxu1 %v2999_v2 }
 0x2f9   : > { %v1567_v15 = vpop.f32.mrb[16].mxu0 }
 0x2fa   : > { %v1644_v1 = vpop.f32.mrb[16].mxu1  ;;  %v1569_v16 = vpop.f32.mrb[17].mxu0  ;;  %v1568_v18 = vadd.f32 %v1567_v15, %v1464_v17  ;;  %v1834_v15 = vsub.s32 0, %v1833_v12 }
 0x2fb   : > { %v1646_v58 = vpop.f32.mrb[17].mxu1  ;;  %v1645_v20 = vadd.f32 %v1644_v1, %v1464_v17  ;;  %v1570_v21 = vadd.f32 %v1569_v16, %v1464_v17  ;;  %v1830_v1 = vpop.permute.xlu0 %1829  ;;  %v2161_v16 = vunpack.c.0.s8 %v2160_v14 }
 0x2fc   : > { %v1647_v23 = vadd.f32 %v1646_v58, %v1464_v17  ;;  %v1809_v30 = vmax.f32 %v1568_v18, 0.0 }
 0x2fd   : > { %v1573_v22 = vpop.f32.mrb[18].mxu0  ;;  %v1811_v33 = vmax.f32 %v1645_v20, 0.0  ;;  %v1810_v34 = vmax.f32 %v1570_v21, 0.0  ;;  %v2164_v21 = vsub.s32 %v2161_v16, %v1833_v12 }
 0x2fe   : > { %v1574_v24 = vadd.f32 %v1573_v22, %v1469_v19  ;;  %v1650_v25 = vpop.f32.mrb[18].mxu1  ;;  %v1575_v26 = vpop.f32.mrb[19].mxu0  ;;  %v1812_v37 = vmax.f32 %v1647_v23, 0.0 }
 0x2ff   : > { %v1651_v27 = vadd.f32 %v1650_v25, %v1469_v19  ;;  %v1576_v28 = vadd.f32 %v1575_v26, %v1469_v19  ;;  %v1652_v29 = vpop.f32.mrb[19].mxu1 }
 0x300   : > { %v1817_v31 = vmax.f32 %v1574_v24, 0.0  ;;  %v1653_v32 = vadd.f32 %v1652_v29, %v1469_v19 }
 0x301   : > { %v1819_v35 = vmax.f32 %v1651_v27, 0.0  ;;  %v1818_v36 = vmax.f32 %v1576_v28, 0.0 }
 0x302   : > { %v2868_v38 = vpack.c.bf16 %v1817_v31, %v1809_v30  ;;  %v1820_v39 = vmax.f32 %v1653_v32, 0.0 }
 0x303   : > { %v2874_v40 = vpack.c.bf16 %v1819_v35, %v1811_v33  ;;  %v2865_v41 = vpack.c.bf16 %v1818_v36, %v1810_v34 }
 0x304   : > { %v2871_v42 = vpack.c.bf16 %v1820_v39, %v1812_v37 }
 0x305   : > { %2867 = vmatprep.subr.msk.bf16.mxu0 %vm3414_vm4, %v2865_v41 }
 0x306   : > { %2873 = vmatprep.subr.msk.bf16.mxu1 %vm3414_vm4, %v2871_v42  ;;  %2870 = vmatpush1.bf16.msk.msra.mxu0 %vm3414_vm4, %v2868_v38 }
 0x307   : > { %2876 = vmatpush1.bf16.msk.msra.mxu1 %vm3414_vm4, %v2874_v40 }
 0x309   : > { %2465 = vmatmul.mubr.msk.f32.vlgmr.msra.gmra.mrb[24].mxu0 %vm369_vm0, %v1825_v43 }
 0x30a   : > { %2468 = vmatmul.mubr.msk.f32.vlgmr.msra.gmra.mrb[24].mxu1 %vm369_vm0, %v1825_v43  ;;  %2069 = vmatprep.mubr.f32.mxu0 %v2999_v2 }
 0x30b   : > { %2140 = vmatprep.mubr.f32.mxu1 %v2999_v2 }
 0x339   : > { %v1721_v45 = vpop.f32.mrb[20].mxu0 }
 0x33a   : > { %v1798_v46 = vpop.f32.mrb[20].mxu1  ;;  %v1723_v47 = vpop.f32.mrb[21].mxu0  ;;  %v1722_v49 = vadd.f32 %v1721_v45, %v1464_v17 }
 0x33b   : > { %v1800_v48 = vpop.f32.mrb[21].mxu1  ;;  %v1799_v50 = vadd.f32 %v1798_v46, %v1464_v17  ;;  %v1724_v51 = vadd.f32 %v1723_v47, %v1464_v17 }
 0x33c   : > { %v1801_v53 = vadd.f32 %v1800_v48, %v1464_v17  ;;  %v1813_v61 = vmax.f32 %v1722_v49, 0.0  ;;  %v1835_v17 = vrot.slane %v1830_v1, %v1834_v15 }
 0x33d   : > { %v1727_v52 = vpop.f32.mrb[22].mxu0  ;;  %v1815_v0 = vmax.f32 %v1799_v50, 0.0  ;;  %v1814_v2 = vmax.f32 %v1724_v51, 0.0 }
 0x33e   : > { %v1728_v54 = vadd.f32 %v1727_v52, %v1469_v19  ;;  %v1804_v55 = vpop.f32.mrb[22].mxu1  ;;  %v1729_v56 = vpop.f32.mrb[23].mxu0  ;;  %v1816_v5 = vmax.f32 %v1801_v53, 0.0 }
 0x33f   : > { %v1805_v57 = vadd.f32 %v1804_v55, %v1469_v19  ;;  %v1730_v59 = vadd.f32 %v1729_v56, %v1469_v19  ;;  %v1806_v60 = vpop.f32.mrb[23].mxu1 }
 0x340   : > { %v1821_v62 = vmax.f32 %v1728_v54, 0.0  ;;  %v1807_v63 = vadd.f32 %v1806_v60, %v1469_v19 }
 0x341   : > { %v1823_v3 = vmax.f32 %v1805_v57, 0.0  ;;  %v1822_v4 = vmax.f32 %v1730_v59, 0.0 }
 0x342   : > { %v2880_v6 = vpack.c.bf16 %v1821_v62, %v1813_v61  ;;  %v1824_v7 = vmax.f32 %v1807_v63, 0.0 }
 0x343   : > { %v2886_v8 = vpack.c.bf16 %v1823_v3, %v1815_v0  ;;  %v2877_v9 = vpack.c.bf16 %v1822_v4, %v1814_v2 }
 0x344   : > { %v2883_v10 = vpack.c.bf16 %v1824_v7, %v1816_v5 }
 0x345   : > { %2879 = vmatprep.subr.msk.bf16.mxu0 %vm3414_vm4, %v2877_v9 }
 0x346   : > { %2885 = vmatprep.subr.msk.bf16.mxu1 %vm3414_vm4, %v2883_v10  ;;  %2882 = vmatpush1.bf16.msk.msra.mxu0 %vm3414_vm4, %v2880_v6 }
 0x347   : > { %2888 = vmatpush1.bf16.msk.msra.mxu1 %vm3414_vm4, %v2886_v8 }
 0x349   : > { %2471 = vmatmul.mubr.msk.f32.vlgmr.msra.gmra.mrb[26].mxu0 %vm369_vm0, %v1825_v43 }
 0x34a   : > { %2474 = vmatmul.mubr.msk.f32.vlgmr.msra.gmra.mrb[26].mxu1 %vm369_vm0, %v1825_v43 }
 0x3dc   : > { %v1929_v58 = vpop.f32.mrb[24].mxu0 }
 0x3dd   : > { %v1930_v18 = vadd.f32 %v1929_v58, %v1835_v17  ;;  %v2000_v19 = vpop.f32.mrb[24].mxu1  ;;  %v1931_v20 = vpop.f32.mrb[25].mxu0 }
 0x3de   : > { %v2001_v44 = vadd.f32 %v2000_v19, %v1835_v17  ;;  %v1932_v22 = vadd.f32 %v1931_v20, %v1835_v17  ;;  %v2002_v23 = vpop.f32.mrb[25].mxu1 }
 0x3df   : > { %v2003_v24 = vadd.f32 %v2002_v23, %v1835_v17 }
 0x3e0   : > { %v2155_v25 = vcombine.low %v1930_v18, %v1932_v22 }
 0x3e1   : > { %v2156_v26 = vcombine.low %v2001_v44, %v2003_v24 }
 0x3e2   : > { %v2165_v27 = vrot.slane %v2155_v25, %v2164_v21 }
 0x3e3   : > { %v2172_v28 = vrot.slane %v2156_v26, %v2164_v21 }
 0x3e5   : > { %v2187_v29 = vcombine.low %v2165_v27, %v2172_v28 }
 0x3e7   : > { %v2195_v43 = vrot.slane %v2187_v29, %v2164_v21 }
 0x41c   : > { %v2071_v30 = vpop.f32.mrb[26].mxu0 }
 0x41d   : > { %v2072_v31 = vadd.f32 %v2071_v30, %v1835_v17  ;;  %v2142_v32 = vpop.f32.mrb[26].mxu1  ;;  %v2073_v33 = vpop.f32.mrb[27].mxu0 }
 0x41e   : > { %v2143_v34 = vadd.f32 %v2142_v32, %v1835_v17  ;;  %v2074_v35 = vadd.f32 %v2073_v33, %v1835_v17  ;;  %v2144_v36 = vpop.f32.mrb[27].mxu1 }
 0x41f   : > { %v2145_v37 = vadd.f32 %v2144_v36, %v1835_v17 }
 0x420   : > { %v2157_v38 = vcombine.low %v2072_v31, %v2074_v35 }
 0x421   : > { %v2158_v39 = vcombine.low %v2143_v34, %v2145_v37 }
 0x422   : > { %v2179_v40 = vrot.slane %v2157_v38, %v2164_v21 }
 0x423   : > { %v2186_v41 = vrot.slane %v2158_v39, %v2164_v21 }
 0x425   : > { %v2188_v42 = vcombine.low %v2179_v40, %v2186_v41 }
 0x427   : > { %v2202_v45 = vrot.slane %v2188_v42, %v2164_v21 }
 0x429   : > { %v2203_v46 = vcombine.low %v2195_v43, %v2202_v45 }
 0x42b   : > { %2205 = vst [vmem:[%s220_s27] sm:$0xff] %v2203_v46 }
 0x42c   : > { %2947 = shalt.err (!%p2944_p3)
}
 0x42d   : > { %s2948_s6 = scalar_lea.hbm %s3524_s10, 128  ;;  %s2952_s18 = scalar_lea.hbm %s3571_s5, 384 }
 0x42e   : > { %p2949_p4 = scmp.ne.s32.totalorder %s3524_s10, %s2948_s6  ;;  %p2953_p9 = scmp.lt.u32.totalorder %s3524_s10, %s3571_s5 }
 0x42f   : > { %p2954_p10 = scmp.lt.u32.totalorder %s2952_s18, %s2948_s6  ;;  %p2956_p12 = scmp.lt.u32.totalorder %s2948_s6, %s3524_s10 }
 0x430   : > { %p2950_p7 = pnand %p2949_p4, %p3071_p5 }
 0x431   : > { %p2955_p11 = por %p2954_p10, %p2953_p9 }
 0x432   : > { %p2951_p8 = pneg %p2950_p7 }
 0x433   : > { %p2957_p13 = por %p2956_p12, %p2955_p11 }
 0x435   : > { %p2958_p0 = pnand %p2957_p13, %p2951_p8 }
 0x437   : > { %2961 = shalt.err (!%p2958_p0)
}
 0x438   : > { %2889 = dma.vmem_to_hbm [thread:$0]  (%p3071_p5), %s3526_s7, 128, %s3524_s10, %s2207_s11  }
 0x439 PF: > { %p2895_p1 = scmp.ge.s32.totalorder %s2996_s23, 2  ;;  %s2233_s24 = sand.u32 1, %s2984_s20  }
 0x43a   : > { %s2234_s26 = scalar_lea.sflag [#allocation4], %s2233_s24 }
 0x43b   : > { %p2892_p2 = pnand %p2895_p1, %p3075_p6 }
 0x43d   : > { %2979 = dma.done.wait (!%p2892_p2), %s2234_s26, 128  }
 0x43e   : > { %2981 = vsyncadd (!%p2892_p2), %s2234_s26, 4294967168  ;;  %p17_p3 = scmp.ge.s32.totalorder %s3059_s25, 5   ;;  %s3578_s20 = smov %s2988_s21 }
 0x43f   : > { %s3579_s21 = smov %s2992_s22  ;;  %s3580_s22 = smov %s3069_s28 }
 0x440   : > { %s3581_s23 = smov %s3059_s25  ;;  %19 = sbr.rel (!%p17_p3) target bundleno = 6 (0x6), region = 79 }
 0x447   :  { %2239 = vsyncpa [#allocation4], 1 }
 0x448   :  { %2241 = vsyncpa [#allocation4 + $0x1], 1 }

</bundles_post_ra>
